<compile_context>
chip_gen: v7x
topology: tpu7x:2x2x1
jax: 0.10.0
libtpu: 0.0.40
codegen_flags: <defaults>
</compile_context>

<pallas_src>
import math

import jax
import jax.numpy as jnp
from jax.experimental import pallas as pl
from jax.experimental.pallas import tpu as pltpu

# -------------------- small-shape config --------------------
D_MODEL = 32      # Generator d_model
VOCAB = 128       # Generator vocab (chosen lane-dense: multiple of 128)
B = 2             # batch
S = 8             # sequence length
TM = 8            # row tile (sublane-aligned)


# ==================== Pallas kernel ====================

def generator_kernel(x_ref, w_ref, b_ref, o_ref):
    """Fused linear + log_softmax.

    x_ref: (TM, D_MODEL)   activations for TM tokens
    w_ref: (D_MODEL, VOCAB) pre-transposed Linear weight
    b_ref: (1, VOCAB)       Linear bias
    o_ref: (TM, VOCAB)      log-probabilities
    """
    logits = jnp.dot(x_ref[...], w_ref[...], preferred_element_type=jnp.float32)
    logits = logits + b_ref[...]
    # numerically stable log_softmax along the last (lane) axis
    m = jnp.max(logits, axis=-1, keepdims=True)
    shifted = logits - m
    lse = jnp.log(jnp.sum(jnp.exp(shifted), axis=-1, keepdims=True))
    o_ref[...] = shifted - lse


def generator_forward(x, w_t, b):
    """x: (..., D_MODEL); w_t: (D_MODEL, VOCAB); b: (VOCAB,) -> (..., VOCAB)."""
    lead = x.shape[:-1]
    d = x.shape[-1]
    x2d = x.reshape(-1, d)
    M = x2d.shape[0]
    N = w_t.shape[1]

    # Tile rows if evenly divisible (gives v7x a real parallel axis); otherwise
    # fall back to a single whole-array block.
    tm = TM if (M % TM == 0) else M
    grid = (M // tm,)

    out2d = pl.pallas_call(
        generator_kernel,
        out_shape=jax.ShapeDtypeStruct((M, N), jnp.float32),
        grid=grid,
        in_specs=[
            pl.BlockSpec((tm, d), lambda i: (i, 0)),
            pl.BlockSpec((d, N), lambda i: (0, 0)),
            pl.BlockSpec((1, N), lambda i: (0, 0)),
        ],
        out_specs=pl.BlockSpec((tm, N), lambda i: (i, 0)),
        compiler_params=pltpu.CompilerParams(
            dimension_semantics=("parallel",)),
    )(x2d, w_t, b.reshape(1, N))

    return out2d.reshape(*lead, N)


# ==================== deterministic parameter init ====================

def init_params(key):
    """PyTorch nn.Linear default init: U(-1/sqrt(fan_in), 1/sqrt(fan_in))."""
    k_w, k_b = jax.random.split(key)
    bound = 1.0 / math.sqrt(D_MODEL)
    # PyTorch weight is (VOCAB, D_MODEL); store the transpose for the GEMM.
    w = jax.random.uniform(k_w, (VOCAB, D_MODEL), jnp.float32, -bound, bound)
    b = jax.random.uniform(k_b, (VOCAB,), jnp.float32, -bound, bound)
    return {"w_t": w.T, "b": b}


# ==================== main ====================

if __name__ == "__main__":
    root = jax.random.PRNGKey(0)
    k_params, k_x = jax.random.split(root)

    params = init_params(k_params)
    x = jax.random.normal(k_x, (B, S, D_MODEL), jnp.float32)

    out = generator_forward(x, params["w_t"], params["b"])
    out = jax.block_until_ready(out)

    assert out.shape == (B, S, VOCAB)
    assert bool(jnp.all(jnp.isfinite(out)))

    # reference check against plain JAX (== F.log_softmax(x @ W.T + b, dim=-1))
    ref = jax.nn.log_softmax(
        x.reshape(-1, D_MODEL) @ params["w_t"] + params["b"], axis=-1
    ).reshape(B, S, VOCAB)
    assert bool(jnp.allclose(out, ref, atol=1e-5, rtol=1e-5))

    # log-probs must sum to 1 after exp
    assert bool(jnp.allclose(jnp.sum(jnp.exp(out), axis=-1), 1.0, atol=1e-4))

    print("KERNEL_OK")
</pallas_src>

<mosaic_0001>
module attributes {stable_mosaic.version = 11 : i64} {
  func.func @generator_kernel(%arg0: i32, %arg1: memref<8x32xf32, #tpu.memory_space<vmem>>, %arg2: memref<32x128xf32, #tpu.memory_space<vmem>>, %arg3: memref<1x128xf32, #tpu.memory_space<vmem>>, %arg4: memref<8x128xf32, #tpu.memory_space<vmem>>) attributes {dimension_semantics = [#tpu.dimension_semantics<parallel>], iteration_bounds = array<i64: 2>, scalar_prefetch = 0 : i64, scratch_operands = 0 : i64, tpu.core_type = #tpu.core_type<tc>, window_params = [{transform_indices = @transform_0, window_bounds = array<i64: 8, 32>}, {pipeline_mode = #tpu.pipeline_mode<synchronous>, transform_indices = @transform_1, window_bounds = array<i64: 32, 128>}, {pipeline_mode = #tpu.pipeline_mode<synchronous>, transform_indices = @transform_2, window_bounds = array<i64: 1, 128>}, {transform_indices = @transform_3, window_bounds = array<i64: 8, 128>}]} {
    %c0 = arith.constant 0 : index
    %c0_0 = arith.constant 0 : index
    %0 = vector.load %arg1[%c0, %c0_0] : memref<8x32xf32, #tpu.memory_space<vmem>>, vector<8x32xf32>
    %c0_1 = arith.constant 0 : index
    %c0_2 = arith.constant 0 : index
    %1 = vector.load %arg2[%c0_1, %c0_2] : memref<32x128xf32, #tpu.memory_space<vmem>>, vector<32x128xf32>
    %cst = arith.constant dense<0.000000e+00> : vector<8x128xf32>
    %2 = tpu.matmul %0, %1, %cst {dimension_numbers = #tpu.dot_dimension_numbers<[1], [0], [0], [1], [0, 0, 1, 1], [], []>} : vector<8x32xf32>, vector<32x128xf32>, vector<8x128xf32> -> vector<8x128xf32>
    %c0_3 = arith.constant 0 : index
    %c0_4 = arith.constant 0 : index
    %3 = vector.load %arg3[%c0_3, %c0_4] : memref<1x128xf32, #tpu.memory_space<vmem>>, vector<1x128xf32>
    %4 = vector.broadcast %3 : vector<1x128xf32> to vector<8x128xf32>
    %5 = arith.addf %2, %4 : vector<8x128xf32>
    %cst_5 = arith.constant dense<0xFF800000> : vector<8xf32>
    %6 = vector.multi_reduction <maximumf>, %5, %cst_5 [1] : vector<8x128xf32> to vector<8xf32>
    %7 = vector.shape_cast %6 : vector<8xf32> to vector<8x1xf32>
    %8 = vector.broadcast %7 : vector<8x1xf32> to vector<8x128xf32>
    %9 = arith.subf %5, %8 : vector<8x128xf32>
    %10 = math.exp %9 : vector<8x128xf32>
    %cst_6 = arith.constant dense<0.000000e+00> : vector<8xf32>
    %11 = vector.multi_reduction <add>, %10, %cst_6 [1] : vector<8x128xf32> to vector<8xf32>
    %12 = vector.shape_cast %11 : vector<8xf32> to vector<8x1xf32>
    %13 = math.log %12 : vector<8x1xf32>
    %14 = vector.broadcast %13 : vector<8x1xf32> to vector<8x128xf32>
    %15 = arith.subf %9, %14 : vector<8x128xf32>
    %c0_7 = arith.constant 0 : index
    %c0_8 = arith.constant 0 : index
    %16 = vector.load %arg4[%c0_7, %c0_8] : memref<8x128xf32, #tpu.memory_space<vmem>>, vector<8x128xf32>
    tpu.vector_store %arg4[%c0_7, %c0_8], %15 {strides = array<i32>} : memref<8x128xf32, #tpu.memory_space<vmem>>, vector<8x128xf32>,
    return
  }
  func.func @transform_0(%arg0: i32) -> (i32, i32) {
    %c0_i32 = arith.constant 0 : i32
    %c0_i32_0 = arith.constant 0 : i32
    return %arg0, %c0_i32 : i32, i32
  }
  func.func @transform_1(%arg0: i32) -> (i32, i32) {
    %c0_i32 = arith.constant 0 : i32
    %c0_i32_0 = arith.constant 0 : i32
    %c0_i32_1 = arith.constant 0 : i32
    return %c0_i32, %c0_i32_0 : i32, i32
  }
  func.func @transform_2(%arg0: i32) -> (i32, i32) {
    %c0_i32 = arith.constant 0 : i32
    %c0_i32_0 = arith.constant 0 : i32
    %c0_i32_1 = arith.constant 0 : i32
    return %c0_i32, %c0_i32_0 : i32, i32
  }
  func.func @transform_3(%arg0: i32) -> (i32, i32) {
    %c0_i32 = arith.constant 0 : i32
    %c0_i32_0 = arith.constant 0 : i32
    return %arg0, %c0_i32 : i32, i32
  }
}

</mosaic_0001>

<bundles_post_ra>
// kernel: tpu_custom_call.1
= control target key start
LH: loop header
LB: loop body
LE: loop exit
PB: predicated region body
PF: predicated region fallthrough
CT: control target
= control target key end

     0   :  { %8 = vsyncpa [#allocation3], 0  ;;  %s857_s0 = inlined_call_operand.hbm [shape: f32[16,32], index: 0, kind: input, shape index: {}]   ;;  %s858_s1 = inlined_call_operand.hbm [shape: f32[32,128], index: 1, kind: input, shape index: {}]   ;;  %s859_s2 = inlined_call_operand.vmem [shape: f32[1,128], index: 2, kind: input, shape index: {}]   ;;  %s860_s3 = inlined_call_operand.hbm [shape: f32[16,128], index: 3, kind: output, shape index: {}]  }
   0x1   :  { %10 = vsyncpa [#allocation3 + $0x1], 0 }
   0x2   :  { %11 = vsyncpa [#allocation6], 0 }
   0x3   :  { %12 = vsyncpa [#allocation4], 0 }
   0x4   :  { %14 = vsyncpa [#allocation4 + $0x1], 0  ;;  %s654_s12 = smov 0   ;;  %s656_s13 = smov 0  }
   0x5   :  { %s658_s14 = smov 0   ;;  %s660_s15 = smov 0  }
   0x6 LB: > { %s675_s16 = sadd.s32 4294967295, %s624_s15   ;;  %s392_s17 = sadd.s32 4294967294, %s624_s15   ;;  %s624_s15 = sphi %s660_s15, %s880_s15   ;;  %s620_s14 = sphi %s658_s14, %s879_s14   ;;  %s616_s13 = sphi %s656_s13, %s878_s13   ;;  %s612_s12 = sphi %s654_s12, %s877_s12  }
   0x7   : > { %p40_p0 = scmp.ne.s32.totalorder %s616_s13, %s612_s12  ;;  %p861_p1 = scmp.eq.s32.totalorder %s675_s16, 0 }
   0x8   : > { %p112_p3 = scmp.eq.s32.totalorder %s392_s17, 1  ;;  %p393_p5 = scmp.ge.s32.totalorder %s624_s15, 1 }
   0x9   : > { %p684_p4 = por %p861_p1, %p40_p0  ;;  %p119_p7 = scmp.lt.s32.totalorder %s624_s15, 3 }
   0xa   : > { %p689_p6 = por %p112_p3, %p40_p0  ;;  %s626_s21 = smov [#allocation5]  }
   0xb   : > { %s864_s18 = scalar_select %p684_p4, 1, 0 }
   0xc   : > { %s865_s19 = scalar_select %p689_p6, 1, 0 }
   0xd   : > { %p694_p8 = pnand %p393_p5, %p119_p7  ;;  %s131_s22 = sshll.u32 %s626_s21, 4  ;;  %s698_s22 = int_to_ptr.vmem [resolvable:$true] %s131_s22 }
   0xe   : > { %s710_s24 = sadd.s32 1, %s624_s15   ;;  %s27_s25 = sadd.s32 1, %s620_s14 }
   0xf   : > { %s866_s20 = scalar_select %p694_p8, 1, 0 }
  0x10   : > { %p438_p9 = pneg %p694_p8  ;;  %s24_s26 = ssub.s32 %s624_s15, %s710_s24 }
  0x11   : > { %s496_s29 = scalar_lea.hbm %s858_s1, 512 }
  0x12   : > { %p705_p11 = pnand %p438_p9, %p861_p1  ;;  %p497_p12 = scmp.ne.s32.totalorder %s858_s1, %s496_s29 }
  0x13   : > { %p503_p5 = scmp.lt.u32.totalorder %s496_s29, %s858_s1 }
  0x14   : > { %p498_p13 = pneg %p705_p11 }
  0x16   : > { %p499_p0 = pnand %p498_p13, %p497_p12 }
  0x18   : > { %p500_p3 = pneg %p499_p0 }
  0x1a   : > { %p505_p7 = pnand %p503_p5, %p500_p3 }
  0x1c   : > { %508 = shalt.err (!%p505_p7)
}
  0x1d   : > { %s509_s7 = scalar_lea.vmem %s698_s22, 512  ;;  %p517_p2 = scmp.lt.s32.totalorder %s698_s22, %s698_s22 }
  0x1e   : > { %p510_p9 = scmp.ne.s32.totalorder %s698_s22, %s509_s7  ;;  %p518_p6 = scmp.lt.s32.totalorder %s509_s7, %s509_s7 }
  0x20   : > { %p512_p10 = pnand %p510_p9, %p498_p13  ;;  %p519_p4 = por %p518_p6, %p517_p2 }
  0x22   : > { %p513_p1 = pneg %p512_p10 }
  0x24   : > { %p520_p8 = pnand %p519_p4, %p513_p1 }
  0x26   : > { %523 = shalt.err (!%p520_p8)
}
  0x27   : > { %s627_s8 = smov 128   ;;  %s628_s9 = smov 8  }
  0x28   : > { %441 = dma.hbm_to_vmem [thread:$0]  (!%p705_p11), %s858_s1, 512, %s698_s22, [#allocation6], %s627_s8, %s627_s8, %s628_s9  }
  0x29   : > { %p25_p2 = scmp.eq.s32.totalorder %s24_s26, 0  ;;  %p34_p1 = scmp.ne.s32.totalorder %s620_s14, %s616_s13 }
  0x2a   : > { %p35_p4 = scmp.eq.s32.totalorder %s624_s15, 0  ;;  %p451_p6 = scmp.lt.s32.totalorder %s624_s15, 2 }
  0x2b   : > { %s741_s17 = scalar_select %p25_p2, %s620_s14, %s27_s25  }
  0x2c   : > { %p36_p8 = por %p35_p4, %p34_p1  ;;  %p868_p10 = scmp.eq.s32.totalorder %s675_s16, 1 }
  0x2d   : > { %s148_s27 = sand.u32 1, %s620_s14   ;;  %s397_s28 = sshll.u32 %s624_s15, 7 }
  0x2e   : > { %p745_p12 = por %p868_p10, %p34_p1  ;;  %s396_s29 = sshll.u32 %s148_s27, 3 }
  0x2f   : > { %s754_s4 = scalar_lea.hbm %s857_s0, %s397_s28  ;;  %s152_s22 = scalar_lea.vmem [#allocation2], %s396_s29 }
  0x30   : > { %s159_s25 = sshll.u32 %s152_s22, 4  ;;  %p756_p11 = pnand %p451_p6, %p36_p8  ;;  %s760_s25 = int_to_ptr.vmem [resolvable:$true] %s159_s25 }
  0x31   : > { %s149_s5 = scalar_lea.sflag [#allocation3], %s148_s27  ;;  %s524_s6 = scalar_lea.hbm %s754_s4, 128 }
  0x32   : > { %p525_p13 = scmp.ne.s32.totalorder %s754_s4, %s524_s6  ;;  %p526_p0 = pneg %p756_p11 }
  0x33   : > { %s529_s9 = scalar_lea.hbm %s857_s0, 256  ;;  %p530_p7 = scmp.lt.u32.totalorder %s754_s4, %s857_s0 }
  0x34   : > { %p527_p3 = pnand %p526_p0, %p525_p13  ;;  %p531_p9 = scmp.lt.u32.totalorder %s529_s9, %s524_s6 }
  0x35   : > { %p533_p1 = scmp.lt.u32.totalorder %s524_s6, %s754_s4 }
  0x36   : > { %p528_p5 = pneg %p527_p3  ;;  %p532_p2 = por %p531_p9, %p530_p7 }
  0x38   : > { %p534_p4 = por %p533_p1, %p532_p2 }
  0x3a   : > { %p535_p6 = pnand %p534_p4, %p528_p5 }
  0x3c   : > { %538 = shalt.err (!%p535_p6)
}
  0x3d   : > { %s539_s27 = scalar_lea.vmem %s760_s25, 128  ;;  %s629_s28 = smov [#allocation2]  }
  0x3e   : > { %p540_p8 = scmp.ne.s32.totalorder %s760_s25, %s539_s27  ;;  %s544_s29 = sshll.u32 %s629_s28, 4  ;;  %s545_s29 = int_to_ptr.vmem [resolvable:$false] %s544_s29 }
  0x3f   : > { %s546_s23 = scalar_lea.vmem %s545_s29, 256  ;;  %p547_p3 = scmp.lt.s32.totalorder %s760_s25, %s545_s29 }
  0x40   : > { %p542_p10 = pnand %p540_p8, %p526_p0  ;;  %p548_p7 = scmp.lt.s32.totalorder %s546_s23, %s539_s27 }
  0x42   : > { %p543_p13 = pneg %p542_p10  ;;  %p549_p9 = por %p548_p7, %p547_p3 }
  0x44   : > { %p550_p2 = pnand %p549_p9, %p543_p13 }
  0x46   : > { %553 = shalt.err (!%p550_p2)
}
  0x47   : > { %445 = dma.hbm_to_vmem [thread:$0]  (!%p756_p11), %s754_s4, 128, %s760_s25, %s149_s5  }
  0x48   : > { %p871_p5 = scmp.ne.s32.totalorder %s866_s20, 0 }
  0x49   : > { %s790_s30 = sand.u32 (!%p871_p5), 1, %s616_s13   ;;  %p872_p0 = scmp.ne.s32.totalorder (!%p871_p5), %s864_s18, 0 }
  0x4a   : > { %168 = sbr.rel (%p871_p5) target bundleno = 637 (0x27d), region = 32  ;;  %s399_s22 = sshll.u32 (!%p871_p5), %s790_s30, 3 }
  0x4b   : > { %s171_s6 = scalar_lea.sflag (!%p871_p5), [#allocation3], %s790_s30  ;;  %s174_s7 = scalar_lea.vmem (!%p871_p5), [#allocation2], %s399_s22 }
  0x51   : > { %599 = dma.done.wait (%p872_p0), %s171_s6, 128  }
  0x52   : > { %601 = vsyncadd (%p872_p0), %s171_s6, 4294967168  ;;  %p873_p11 = scmp.eq.s32.totalorder %s675_s16, 0 }
  0x54   : > { %603 = dma.done.wait (%p873_p11), [#allocation6], 512   ;;  %p874_p1 = pmov %p873_p11 }
  0x55   : > { %v630_v0 = vmov 0.0|0.0   ;;  %vm631_vm0 = vmmov 0   ;;  %v632_v1 = vmov 0.0   ;;  %v202_v2 = vld [vmem:[#allocation5] sm:$0xff]  ;;  %v203_v3 = vld [vmem:[#allocation5 + $0x8] sm:$0xff]  ;;  %v204_v4 = vld [vmem:[#allocation5 + $0x10] sm:$0xff] }
  0x56   : > { %605 = vsyncadd (%p874_p1), [#allocation6], 4294966784  ;;  %424 = vmatprep.subr.bf16.mxu0 %v630_v0  ;;  %421 = vmatprep.mubr.msk.f32.mxu0 %vm631_vm0, %v632_v1  ;;  %v425_v5 = vpack.c.bf16 %v203_v3, %v202_v2  ;;  %v205_v6 = vld [vmem:[#allocation5 + $0x18] sm:$0xff]  ;;  %vm213_vm1 = vcmask 261120   ;;  %v402_v9 = vld [vmem:[%s859_s2] ss:$0 sm:$0xff] }
  0x57   : > { %v428_v7 = vpack.c.bf16 %v205_v6, %v204_v4  ;;  %v201_v8 = vld [vmem:[%s174_s7] sm:$0xff]  ;;  %s405_s4 = sshll.u32 %s675_s16, 7  ;;  %s200_s25 = scalar_lea.vmem [#allocation7], %s399_s22 }
  0x58   : > { %426 = vmatpush3.bf16.msra.mxu0 %v425_v5  ;;  %s312_s26 = sshll.u32 %s200_s25, 4  ;;  %s813_s9 = scalar_lea.hbm %s860_s3, %s405_s4  ;;  %s815_s26 = int_to_ptr.vmem [resolvable:$true] %s312_s26 }
  0x59   : > { %427 = vmatprep.subr.bf16.mxu0 %v630_v0  ;;  %s299_s10 = scalar_lea.sflag [#allocation4], %s790_s30  ;;  %s554_s11 = scalar_lea.vmem %s815_s26, 128 }
  0x5a   : > { %p555_p4 = scmp.ne.s32.totalorder %s815_s26, %s554_s11  ;;  %s633_s16 = smov [#allocation7]  }
  0x5b   : > { %s558_s27 = sshll.u32 %s633_s16, 4  ;;  %s559_s27 = int_to_ptr.vmem [resolvable:$false] %s558_s27 }
  0x5c   : > { %429 = vmatpush3.bf16.msra.mxu0 %v428_v7  ;;  %p556_p6 = pnand %p555_p4, %p745_p12  ;;  %s560_s28 = scalar_lea.vmem %s559_s27, 256 }
  0x5d   : > { %p561_p10 = scmp.lt.s32.totalorder %s815_s26, %s559_s27  ;;  %p562_p13 = scmp.lt.s32.totalorder %s560_s28, %s554_s11 }
  0x5e   : > { %p557_p8 = pneg %p556_p6 }
  0x5f   : > { %422 = vmatmul.mubr.msk.f32.vlgmr.msra.gmra.mrb[0].mxu0 %vm213_vm1, %v201_v8  ;;  %p563_p3 = por %p562_p13, %p561_p10 }
  0x61   : > { %p564_p7 = pnand %p563_p3, %p557_p8 }
 0x132   : > { %v283_v10 = vpop.f32.mrb[0].mxu0 }
 0x133   : > { %v284_v11 = vadd.f32 %v402_v9, %v283_v10  ;;  %v423_v12 = vpop.f32.mrb[1].mxu0 }
 0x135   : > { %287 = vmax.xlane.f32.xlu0 %v284_v11 }
 0x1c2   : > { %v288_v13 = vpop.xlane.xlu0 %287 }
 0x1c3   : > { %v289_v14 = vsub.f32 %v284_v11, %v288_v13 }
 0x1c5   : > { %v290_v15 = vmul.f32 1.442695, %v289_v14 }
 0x1c7   : > { %492 = vpow2.f32 %v290_v15 }
 0x1d1   : > { %v493_v16 = vpop.eup %492 }
 0x1d2   : > { %292 = vadd.xlane.f32.xlu0 %v493_v16 }
 0x25f   : > { %v293_v17 = vpop.xlane.xlu0 %292 }
 0x260   : > { %494 = vlog2.f32 %v293_v17 }
 0x26a   : > { %v495_v18 = vpop.eup %494 }
 0x26b   : > { %v295_v19 = vmul.f32 0.6931472, %v495_v18 }
 0x26d   : > { %v296_v20 = vsub.f32 %v289_v14, %v295_v19 }
 0x26f   : > { %297 = vst [vmem:[%s200_s25] sm:$0xff] %v296_v20 }
 0x270   : > { %567 = shalt.err (!%p564_p7)
}
 0x271   : > { %s568_s29 = scalar_lea.hbm %s813_s9, 128  ;;  %s572_s22 = scalar_lea.hbm %s860_s3, 256 }
 0x272   : > { %p569_p9 = scmp.ne.s32.totalorder %s813_s9, %s568_s29  ;;  %p573_p0 = scmp.lt.u32.totalorder %s813_s9, %s860_s3 }
 0x273   : > { %p574_p11 = scmp.lt.u32.totalorder %s572_s22, %s568_s29  ;;  %p576_p4 = scmp.lt.u32.totalorder %s568_s29, %s813_s9 }
 0x274   : > { %p570_p2 = pnand %p569_p9, %p745_p12 }
 0x275   : > { %p575_p1 = por %p574_p11, %p573_p0 }
 0x276   : > { %p571_p5 = pneg %p570_p2 }
 0x277   : > { %p577_p6 = por %p576_p4, %p575_p1 }
 0x279   : > { %p578_p8 = pnand %p577_p6, %p571_p5 }
 0x27b   : > { %581 = shalt.err (!%p578_p8)
}
 0x27c   : > { %436 = dma.vmem_to_hbm [thread:$0]  (%p745_p12), %s815_s26, 128, %s813_s9, %s299_s10  }
 0x27d PF: > { %s324_s18 = sand.u32 1, %s612_s12   ;;  %p875_p10 = scmp.ne.s32.totalorder %s865_s19, 0 }
 0x27e   : > { %p876_p13 = scmp.ge.s32.totalorder %s624_s15, 2  ;;  %s325_s20 = scalar_lea.sflag [#allocation4], %s324_s18 }
 0x280   : > { %p447_p3 = pnand %p876_p13, %p875_p10 }
 0x282   : > { %607 = dma.done.wait (!%p447_p3), %s325_s20, 128  }
 0x283   : > { %609 = vsyncadd (!%p447_p3), %s325_s20, 4294967168  ;;  %p17_p7 = scmp.ge.s32.totalorder %s710_s24, 4   ;;  %s877_s12 = smov %s616_s13 }
 0x284   : > { %s878_s13 = smov %s620_s14  ;;  %s879_s14 = smov %s741_s17 }
 0x285   : > { %s880_s15 = smov %s710_s24  ;;  %19 = sbr.rel (!%p17_p7) target bundleno = 6 (0x6), region = 81 }
 0x28c   :  { %330 = vsyncpa [#allocation3], 1 }
 0x28d   :  { %332 = vsyncpa [#allocation3 + $0x1], 1 }
 0x28e   :  { %333 = vsyncpa [#allocation6], 1 }
 0x28f   :  { %334 = vsyncpa [#allocation4], 1 }
 0x290   :  { %336 = vsyncpa [#allocation4 + $0x1], 1 }

</bundles_post_ra>
